<compile_context>
chip_gen: v5e
topology: v5e:2x2
jax: 0.10.0
libtpu: 0.0.40
codegen_flags: <defaults>
</compile_context>

<pallas_src>
import jax
import jax.numpy as jnp
from jax.experimental import pallas as pl
from jax.experimental.pallas import tpu as pltpu


def conv1x1_relu_kernel(w_ref, b_ref, x_ref, o_ref):
    # w_ref: (Cout, Cin)  b_ref: (Cout, 1)  x_ref: (Cin, TM)  o_ref: (Cout, TM)
    y = jnp.dot(w_ref[...], x_ref[...], preferred_element_type=jnp.float32)
    y = y + b_ref[...]                                   # broadcast over lanes
    o_ref[...] = jnp.maximum(y, 0.0).astype(o_ref.dtype)


def _pick_tile(hw, n_batch):
    """Pick the spatial (lane) tile size TM.

    Rules:
      * TM must be a multiple of 128 unless it equals the full extent HW
        (Pallas (8,128) block constraint).
      * Big tiles amortize the ~0.35 us/step pipeline overhead and give
        larger contiguous DMA chunks; cap at 8192 (per-step VMEM footprint
        ~640*TM bytes -> ~5 MiB at the cap, far under scoped limits).
      * If N == 1, ensure at least 2 grid steps so both v7x TensorCores
        get work (harmless elsewhere).
    """
    CAP = 8192
    if hw < 256:
        return hw                              # single full-extent tile
    tm = min(CAP, (hw // 128) * 128)           # largest 128-multiple <= hw, capped
    if n_batch == 1:
        half = -(-hw // 2)                     # ceil(hw / 2)
        half_r = -(-half // 128) * 128         # round up to multiple of 128
        tm = min(tm, half_r)
    return max(tm, 128)


def model_forward(x_nchw, weight, bias):
    """x_nchw: (N, Cin, H, W), weight: (Cout, Cin, 1, 1), bias: (Cout,)"""
    N, Cin, H, W = x_nchw.shape
    Cout = weight.shape[0]
    HW = H * W

    # Fold epilogue: relu(2*(Wx + b) + 3 - 5) == relu((2W)x + (2b - 2))
    w_mat = (2.0 * weight.reshape(Cout, Cin)).astype(jnp.float32)
    b_col = (2.0 * bias - 2.0).reshape(Cout, 1).astype(jnp.float32)

    # Free view: NCHW -> (N, Cin, HW). No transpose, no pad, no extra HBM copy.
    x_rows = x_nchw.reshape(N, Cin, HW)

    TM = _pick_tile(HW, N)
    n_m = pl.cdiv(HW, TM)                      # partial last tile is masked

    out_rows = pl.pallas_call(
        conv1x1_relu_kernel,
        out_shape=jax.ShapeDtypeStruct((N, Cout, HW), x_nchw.dtype),
        grid_spec=pltpu.PrefetchScalarGridSpec(
            num_scalar_prefetch=0,
            grid=(N, n_m),
            in_specs=[
                pl.BlockSpec((Cout, Cin), lambda n, m: (0, 0)),          # weight (resident)
                pl.BlockSpec((Cout, 1), lambda n, m: (0, 0)),            # bias   (resident)
                pl.BlockSpec((None, Cin, TM), lambda n, m: (n, 0, m)),   # x tile (Cin, TM)
            ],
            out_specs=pl.BlockSpec((None, Cout, TM), lambda n, m: (n, 0, m)),
        ),
        compiler_params=pltpu.CompilerParams(
            dimension_semantics=("parallel", "parallel"),
        ),
    )(w_mat, b_col, x_rows)

    # (N, Cout, HW) -> NCHW (pure reshape, no transpose, no slice)
    return out_rows.reshape(N, Cout, H, W)


if __name__ == "__main__":
    key = jax.random.PRNGKey(0)
    kx, kw, kb = jax.random.split(key, 3)

    # Small shapes consistent with Conv2d(64, 16, 1): Cin=64, Cout=16.
    N, Cin, H, W, Cout = 2, 64, 16, 16, 16
    x = jax.random.normal(kx, (N, Cin, H, W), dtype=jnp.float32)

    # Deterministic parameter init (PyTorch Conv2d shapes: (Cout, Cin, 1, 1), (Cout,))
    bound = 1.0 / (Cin ** 0.5)
    weight = jax.random.uniform(kw, (Cout, Cin, 1, 1), jnp.float32, -bound, bound)
    bias = jax.random.uniform(kb, (Cout,), jnp.float32, -bound, bound)

    out = model_forward(x, weight, bias)
    jax.block_until_ready(out)

    # Reference in plain JAX: 1x1 conv == per-batch channel matmul.
    x_rows = x.reshape(N, Cin, H * W)
    w2 = weight.reshape(Cout, Cin)
    ref = jnp.einsum("oc,ncm->nom", w2, x_rows) + bias.reshape(1, Cout, 1)
    ref = jnp.maximum(2.0 * ref - 2.0, 0.0).reshape(N, Cout, H, W)

    assert out.shape == (N, Cout, H, W)
    assert jnp.allclose(out, ref, atol=1e-4), "mismatch vs reference"

    print("KERNEL_OK")
</pallas_src>

<mosaic_0001>
module attributes {stable_mosaic.version = 11 : i64} {
  func.func @conv1x1_relu_kernel(%arg0: i32, %arg1: i32, %arg2: memref<16x64xf32, #tpu.memory_space<vmem>>, %arg3: memref<16x1xf32, #tpu.memory_space<vmem>>, %arg4: memref<1x64x256xf32, #tpu.memory_space<vmem>>, %arg5: memref<1x16x256xf32, #tpu.memory_space<vmem>>) attributes {dimension_semantics = [#tpu.dimension_semantics<parallel>, #tpu.dimension_semantics<parallel>], iteration_bounds = array<i64: 2, 1>, scalar_prefetch = 0 : i64, scratch_operands = 0 : i64, tpu.core_type = #tpu.core_type<tc>, window_params = [{pipeline_mode = #tpu.pipeline_mode<synchronous>, transform_indices = @transform_0, window_bounds = array<i64: 16, 64>}, {pipeline_mode = #tpu.pipeline_mode<synchronous>, transform_indices = @transform_1, window_bounds = array<i64: 16, 1>}, {transform_indices = @transform_2, window_bounds = array<i64: 1, 64, 256>}, {transform_indices = @transform_3, window_bounds = array<i64: 1, 16, 256>}]} {
    %c0 = arith.constant 0 : index
    %c0_0 = arith.constant 0 : index
    %0 = vector.load %arg2[%c0, %c0_0] : memref<16x64xf32, #tpu.memory_space<vmem>>, vector<16x64xf32>
    %c0_1 = arith.constant 0 : index
    %c0_2 = arith.constant 0 : index
    %c0_3 = arith.constant 0 : index
    %1 = vector.load %arg4[%c0_1, %c0_2, %c0_3] : memref<1x64x256xf32, #tpu.memory_space<vmem>>, vector<1x64x256xf32>
    %2 = vector.shape_cast %1 : vector<1x64x256xf32> to vector<64x256xf32>
    %cst = arith.constant dense<0.000000e+00> : vector<16x256xf32>
    %3 = tpu.matmul %0, %2, %cst {dimension_numbers = #tpu.dot_dimension_numbers<[1], [0], [0], [1], [0, 0, 1, 1], [], []>} : vector<16x64xf32>, vector<64x256xf32>, vector<16x256xf32> -> vector<16x256xf32>
    %c0_4 = arith.constant 0 : index
    %c0_5 = arith.constant 0 : index
    %4 = vector.load %arg3[%c0_4, %c0_5] : memref<16x1xf32, #tpu.memory_space<vmem>>, vector<16x1xf32>
    %5 = vector.broadcast %4 : vector<16x1xf32> to vector<16x256xf32>
    %6 = arith.addf %3, %5 : vector<16x256xf32>
    %cst_6 = arith.constant 0.000000e+00 : f32
    %7 = vector.broadcast %cst_6 : f32 to vector<16x256xf32>
    %8 = arith.maximumf %6, %7 : vector<16x256xf32>
    %c0_7 = arith.constant 0 : index
    %c0_8 = arith.constant 0 : index
    %c0_9 = arith.constant 0 : index
    %9 = vector.load %arg5[%c0_7, %c0_8, %c0_9] : memref<1x16x256xf32, #tpu.memory_space<vmem>>, vector<1x16x256xf32>
    %10 = vector.shape_cast %9 : vector<1x16x256xf32> to vector<16x256xf32>
    %11 = vector.shape_cast %8 : vector<16x256xf32> to vector<1x16x256xf32>
    tpu.vector_store %arg5[%c0_7, %c0_8, %c0_9], %11 {strides = array<i32>} : memref<1x16x256xf32, #tpu.memory_space<vmem>>, vector<1x16x256xf32>,
    return
  }
  func.func @transform_0(%arg0: i32, %arg1: i32) -> (i32, i32) {
    %c0_i32 = arith.constant 0 : i32
    %c0_i32_0 = arith.constant 0 : i32
    %c0_i32_1 = arith.constant 0 : i32
    return %c0_i32, %c0_i32_0 : i32, i32
  }
  func.func @transform_1(%arg0: i32, %arg1: i32) -> (i32, i32) {
    %c0_i32 = arith.constant 0 : i32
    %c0_i32_0 = arith.constant 0 : i32
    %c0_i32_1 = arith.constant 0 : i32
    return %c0_i32, %c0_i32_0 : i32, i32
  }
  func.func @transform_2(%arg0: i32, %arg1: i32) -> (i32, i32, i32) {
    %c0_i32 = arith.constant 0 : i32
    %c0_i32_0 = arith.constant 0 : i32
    return %arg0, %c0_i32, %arg1 : i32, i32, i32
  }
  func.func @transform_3(%arg0: i32, %arg1: i32) -> (i32, i32, i32) {
    %c0_i32 = arith.constant 0 : i32
    %c0_i32_0 = arith.constant 0 : i32
    return %arg0, %c0_i32, %arg1 : i32, i32, i32
  }
}

</mosaic_0001>

<bundles_post_ra>
// kernel: tpu_custom_call.1
= control target key start
LH: loop header
LB: loop body
LE: loop exit
PB: predicated region body
PF: predicated region fallthrough
CT: control target
= control target key end

     0   :  { %8 = vsyncpa [#allocation3], 0  ;;  %s802_s0 = inlined_call_operand.vmem [shape: f32[16,64], index: 0, kind: input, shape index: {}]   ;;  %s803_s1 = inlined_call_operand.vmem [shape: f32[16,1], index: 1, kind: input, shape index: {}]   ;;  %s804_s2 = inlined_call_operand.hbm [shape: f32[2,64,256], index: 2, kind: input, shape index: {}]   ;;  %s805_s3 = inlined_call_operand.hbm [shape: f32[2,16,256], index: 3, kind: output, shape index: {}]  }
   0x1   :  { %10 = vsyncpa [#allocation3 + $0x1], 0 }
   0x2   :  { %11 = vsyncpa [#allocation4], 0 }
   0x3   :  { %13 = vsyncpa [#allocation4 + $0x1], 0  ;;  %s651_s12 = smov 0   ;;  %s653_s13 = smov 0  }
   0x4   :  { %s655_s14 = smov 0   ;;  %s657_s15 = smov 0  }
   0x5   :  { %s659_s16 = smov 0   ;;  %s661_s17 = smov 0  }
   0x6 LB: > { %s407_s18 = sadd.s32 4294967295, %s624_s17   ;;  %s408_s19 = sadd.s32 4294967294, %s624_s17   ;;  %s624_s17 = sphi %s661_s17, %s19_s17   ;;  %s620_s16 = sphi %s659_s16, %s814_s16   ;;  %s616_s15 = sphi %s657_s15, %s813_s15   ;;  %s612_s14 = sphi %s655_s14, %s812_s14   ;;  %s608_s13 = sphi %s653_s13, %s811_s13   ;;  %s604_s12 = sphi %s651_s12, %s810_s12  }
   0x7   : > { %s31_s20 = sadd.s32 1, %s620_s16  ;;  %s82_s21 = sadd.s32 1, %s612_s14 }
   0x8   : > { %p33_p0 = scmp.ge.s32.totalorder %s31_s20, 2  ;;  %p89_p1 = scmp.ne.s32.totalorder %s612_s14, %s608_s13 }
   0x9   : > { %p90_p2 = scmp.eq.s32.totalorder %s624_s17, 0  ;;  %p95_p3 = scmp.ne.s32.totalorder %s608_s13, %s604_s12 }
   0xa   : > { %s816_s20 = smov (%p33_p0, %s31_s20), 0  ;;  %p96_p5 = scmp.eq.s32.totalorder %s407_s18, 0 }
   0xb   : > { %p692_p4 = por %p90_p2, %p89_p1  ;;  %s77_s23 = ssub.s32 %s620_s16, %s816_s20 }
   0xc   : > { %p121_p6 = scmp.eq.s32.totalorder %s407_s18, 1  ;;  %p80_p7 = scmp.eq.s32.totalorder %s77_s23, 0 }
   0xd   : > { %p698_p8 = por %p96_p5, %p95_p3  ;;  %p127_p10 = scmp.eq.s32.totalorder %s408_s19, 1 }
   0xe   : > { %p702_p9 = por %p121_p6, %p89_p1  ;;  %p410_p12 = scmp.ge.s32.totalorder %s624_s17, 2 }
   0xf   : > { %s707_s26 = scalar_select %p80_p7, %s612_s14, %s82_s21  }
  0x10   : > { %p709_p11 = por %p127_p10, %p95_p3  ;;  %p456_p13 = scmp.lt.s32.totalorder %s624_s17, 2 }
  0x11   : > { %s153_s28 = sand.u32 1, %s612_s14   ;;  %s426_s30 = sshll.u32 %s620_s16, 7 }
  0x12   : > { %s411_s29 = sshll.u32 %s153_s28, 7  ;;  %s164_s6 = scalar_lea.hbm %s804_s2, %s426_s30 }
  0x13   : > { %s157_s7 = scalar_lea.vmem [#allocation2], %s411_s29  ;;  %s165_s9 = sshll.u32 %s164_s6, 4  ;;  %s166_s9 = int_to_ptr.hbm [resolvable:$true] %s165_s9 }
  0x14   : > { %s167_s8 = sshll.u32 %s157_s7, 4  ;;  %p449_p0 = pnand %p456_p13, %p692_p4  ;;  %s168_s8 = int_to_ptr.vmem [resolvable:$true] %s167_s8 }
  0x15   : > { %p414_p1 = scmp.ge.s32.totalorder %s624_s17, 1  ;;  %s154_s10 = scalar_lea.sflag [#allocation3], %s153_s28 }
  0x16   : > { %s626_s11 = smov 256   ;;  %s627_s18 = smov 16  }
  0x17   : > { %451 = dma.hbm_to_vmem [thread:$0]  (!%p449_p0), %s166_s9, 2048, %s168_s8, %s154_s10, %s626_s11, %s626_s11, %s627_s18  }
  0x18   : > { %p175_p2 = scmp.lt.s32.totalorder %s624_s17, 3 }
  0x1a   : > { %p176_p3 = pnand %p414_p1, %p175_p2 }
  0x1b   : > { %s725_s19 = sand.u32 (!%p176_p3), 1, %s608_s13  }
  0x1c   : > { %179 = sbr.rel (%p176_p3) target bundleno = 193 (0xc1), region = 32  ;;  %s415_s21 = sshll.u32 (!%p176_p3), %s725_s19, 7 }
  0x1d   : > { %s182_s23 = scalar_lea.sflag (!%p176_p3), [#allocation3], %s725_s19  ;;  %s729_s29 = scalar_lea.vmem (!%p176_p3), [#allocation2], %s415_s21 }
  0x21   : > { %595 = dma.done.wait (%p698_p8), %s182_s23, 2048  }
  0x22   : > { %597 = vsyncadd (%p698_p8), %s182_s23, 4294965248  ;;  %v628_v0 = vmov 0   ;;  %v227_v1 = vld [vmem:[%s729_s29 + $0x70] sm:$0xff]  ;;  %v228_v2 = vld [vmem:[%s729_s29 + $0x78] sm:$0xff]  ;;  %vm241_vm0 = vcmask 523264   ;;  %s416_s8 = sshll.u32 %s725_s19, 5 }
  0x23   : > { %511 = vset.pattern.permute.xlu0 %v628_v0  ;;  %v225_v3 = vld [vmem:[%s729_s29 + $0x60] sm:$0xff]  ;;  %256 = vmatpush.msra.mxu0 %v227_v1  ;;  %v226_v4 = vld [vmem:[%s729_s29 + $0x68] sm:$0xff]  ;;  %v223_v5 = vld [vmem:[%s729_s29 + $0x50] sm:$0xff]  ;;  %s427_s9 = sshll.u32 %s616_s15, 5  ;;  %s208_s21 = scalar_lea.vmem [#allocation5], %s416_s8 }
  0x24   : > { %428 = vmatpush.msra.mxu2 %v227_v1  ;;  %279 = vmatpush.msra.mxu1 %v228_v2  ;;  %v224_v6 = vld [vmem:[%s729_s29 + $0x58] sm:$0xff]  ;;  %v221_v7 = vld [vmem:[%s729_s29 + $0x40] sm:$0xff]  ;;  %v222_v8 = vld [vmem:[%s729_s29 + $0x48] sm:$0xff]  ;;  %s316_s18 = scalar_lea.hbm %s805_s3, %s427_s9  ;;  %s317_s23 = sshll.u32 %s208_s21, 4  ;;  %s318_s23 = int_to_ptr.vmem [resolvable:$true] %s317_s23 }
  0x25   : > { %436 = vmatpush.msra.mxu3 %v228_v2  ;;  %257 = vmatpush.msra.mxu0 %v225_v3  ;;  %v219_v9 = vld [vmem:[%s729_s29 + $0x30] sm:$0xff]  ;;  %v220_v10 = vld [vmem:[%s729_s29 + $0x38] sm:$0xff]  ;;  %v217_v11 = vld [vmem:[%s729_s29 + $0x20] sm:$0xff]  ;;  %s303_s15 = scalar_lea.sflag [#allocation4], %s725_s19  ;;  %s562_s4 = scalar_lea.hbm %s805_s3, 64 }
  0x26   : > { %429 = vmatpush.msra.mxu2 %v225_v3  ;;  %280 = vmatpush.msra.mxu1 %v226_v4  ;;  %v218_v12 = vld [vmem:[%s729_s29 + $0x28] sm:$0xff]  ;;  %v215_v13 = vld [vmem:[%s729_s29 + $0x10] sm:$0xff]  ;;  %v216_v14 = vld [vmem:[%s729_s29 + $0x18] sm:$0xff] }
  0x27   : > { %437 = vmatpush.msra.mxu3 %v226_v4  ;;  %258 = vmatpush.msra.mxu0 %v223_v5  ;;  %v213_v15 = vld [vmem:[%s729_s29] sm:$0xff]  ;;  %v214_v16 = vld [vmem:[%s729_s29 + $0x8] sm:$0xff]  ;;  %s319_s29 = sshll.u32 %s316_s18, 4  ;;  %s320_s29 = int_to_ptr.hbm [resolvable:$true] %s319_s29 }
  0x28   : > { %430 = vmatpush.msra.mxu2 %v223_v5  ;;  %281 = vmatpush.msra.mxu1 %v224_v6  ;;  %v211_v17 = vld [vmem:[%s802_s0] sm:$0xff]  ;;  %v212_v18 = vld [vmem:[%s802_s0 + $0x8] sm:$0xff]  ;;  %s556_s22 = sshra.s32 %s320_s29, 4  ;;  %s557_s22 = int_to_ptr.hbm [resolvable:$true] %s556_s22 }
  0x29   : > { %438 = vmatpush.msra.mxu3 %v224_v6  ;;  %259 = vmatpush.msra.mxu0 %v221_v7  ;;  %v229_v19 = vld [vmem:[%s803_s1] sm:$0xff]  ;;  %v230_v20 = vld [vmem:[%s803_s1 + $0x8] sm:$0xff]  ;;  %s558_s24 = scalar_lea.hbm %s557_s22, 32  ;;  %p563_p7 = scmp.lt.s32.totalorder %s557_s22, %s805_s3 }
  0x2a   : > { %431 = vmatpush.msra.mxu2 %v221_v7  ;;  %282 = vmatpush.msra.mxu1 %v222_v8  ;;  %p559_p4 = scmp.ne.s32.totalorder %s557_s22, %s558_s24  ;;  %p564_p8 = scmp.lt.s32.totalorder %s562_s4, %s558_s24 }
  0x2b   : > { %439 = vmatpush.msra.mxu3 %v222_v8  ;;  %260 = vmatpush.msra.mxu0 %v219_v9 }
  0x2c   : > { %432 = vmatpush.msra.mxu2 %v219_v9  ;;  %283 = vmatpush.msra.mxu1 %v220_v10  ;;  %p560_p5 = pnand %p559_p4, %p702_p9  ;;  %p565_p10 = por %p564_p8, %p563_p7 }
  0x2d   : > { %440 = vmatpush.msra.mxu3 %v220_v10  ;;  %261 = vmatpush.msra.mxu0 %v217_v11 }
  0x2e   : > { %433 = vmatpush.msra.mxu2 %v217_v11  ;;  %284 = vmatpush.msra.mxu1 %v218_v12  ;;  %p561_p6 = pneg %p560_p5 }
  0x2f   : > { %441 = vmatpush.msra.mxu3 %v218_v12  ;;  %262 = vmatpush.msra.mxu0 %v215_v13 }
  0x30   : > { %434 = vmatpush.msra.mxu2 %v215_v13  ;;  %285 = vmatpush.msra.mxu1 %v216_v14  ;;  %p566_p13 = pnand %p565_p10, %p561_p6 }
  0x31   : > { %442 = vmatpush.msra.mxu3 %v216_v14  ;;  %263 = vmatpush.msra.mxu0 %v213_v15 }
  0x32   : > { %435 = vmatpush.msra.mxu2 %v213_v15  ;;  %286 = vmatpush.msra.mxu1 %v214_v16 }
  0x33   : > { %443 = vmatpush.msra.mxu3 %v214_v16  ;;  %417 = vmatmul.msk.f32.vlgmr.msra.gmra.mxu0 %vm241_vm0, %v211_v17 }
  0x34   : > { %418 = vmatmul.msk.f32.vlgmr.msra.gmra.mxu2 %vm241_vm0, %v212_v18  ;;  %419 = vmatmul.msk.f32.vlgmr.msra.gmra.mxu1 %vm241_vm0, %v211_v17 }
  0x35   : > { %420 = vmatmul.msk.f32.vlgmr.msra.gmra.mxu3 %vm241_vm0, %v212_v18  ;;  %233 = vperm.xlu0 %511, %v229_v19  }
  0x3d   : > { %238 = vperm.xlu0 %511, %v230_v20  }
  0xa7   : > { %v234_v21 = vpop.permute.xlu0 %233 }
  0xaf   : > { %v239_v28 = vpop.permute.xlu0 %238 }
  0xb0   : > { %v265_v22 = vpop.f32.mrf.mxu0 }
  0xb1   : > { %v266_v23 = vadd.f32 %v265_v22, %v234_v21  ;;  %v288_v24 = vpop.f32.mrf.mxu1 }
  0xb2   : > { %v289_v25 = vadd.f32 %v288_v24, %v234_v21 }
  0xb3   : > { %v294_v26 = vmax.f32 %v266_v23, 0.0 }
  0xb4   : > { %v295_v27 = vmax.f32 %v289_v25, 0.0 }
  0xb5   : > { %298 = vst [vmem:[%s208_s21] sm:$0xff] %v294_v26 }
  0xb6   : > { %299 = vst [vmem:[%s208_s21 + $0x8] sm:$0xff] %v295_v27 }
  0xb7   : > { %v268_v29 = vpop.f32.mrf.mxu2 }
  0xb8   : > { %v269_v30 = vadd.f32 %v268_v29, %v239_v28  ;;  %v291_v31 = vpop.f32.mrf.mxu3 }
  0xb9   : > { %v292_v32 = vadd.f32 %v291_v31, %v239_v28 }
  0xba   : > { %v296_v33 = vmax.f32 %v269_v30, 0.0 }
  0xbb   : > { %v297_v34 = vmax.f32 %v292_v32, 0.0 }
  0xbc   : > { %300 = vst [vmem:[%s208_s21 + $0x10] sm:$0xff] %v296_v33 }
  0xbd   : > { %301 = vst [vmem:[%s208_s21 + $0x18] sm:$0xff] %v297_v34 }
  0xbe   : > { %569 = shalt.err (!%p566_p13)
}
  0xbf   : > { %s629_s19 = smov 256   ;;  %s630_s7 = smov 16  }
  0xc0   : > { %446 = dma.vmem_to_hbm [thread:$0]  (%p702_p9), %s318_s23, 512, %s320_s29, %s303_s15, %s629_s19, %s629_s19, %s630_s7  }
  0xc1 PF: > { %s334_s8 = sand.u32 1, %s604_s12   ;;  %p453_p0 = pnand %p410_p12, %p709_p11 }
  0xc2   : > { %s335_s9 = scalar_lea.sflag [#allocation4], %s334_s8 }
  0xc3   : > { %p454_p1 = pneg %p453_p0 }
  0xc5   : > { %599 = dma.done.wait (%p454_p1), %s335_s9, 512  }
  0xc6   : > { %601 = vsyncadd (%p454_p1), %s335_s9, 4294966784  ;;  %s19_s17 = sadd.s32 1, %s624_s17   ;;  %s810_s12 = smov %s608_s13 }
  0xc7   : > { %p16_p2 = scmp.ge.s32.totalorder %s19_s17, 4   ;;  %s811_s13 = smov %s612_s14 }
  0xc8   : > { %s812_s14 = smov %s707_s26  ;;  %s813_s15 = smov %s620_s16 }
  0xc9   : > { %s814_s16 = smov %s816_s20  ;;  %18 = sbr.rel (!%p16_p2) target bundleno = 6 (0x6), region = 77 }
  0xce   :  { %341 = vsyncpa [#allocation3], 1 }
  0xcf   :  { %343 = vsyncpa [#allocation3 + $0x1], 1 }
  0xd0   :  { %344 = vsyncpa [#allocation4], 1 }
  0xd1   :  { %346 = vsyncpa [#allocation4 + $0x1], 1 }

</bundles_post_ra>
